<compile_context>
chip_gen: v7x
topology: tpu7x:2x2x1
jax: 0.10.0
libtpu: 0.0.40
codegen_flags: <defaults>
</compile_context>

<pallas_src>
import functools

import jax
import jax.numpy as jnp
import numpy as np
from jax.experimental import pallas as pl
from jax.experimental.pallas import tpu as pltpu


def cnn_lstm_kernel(x_ref, w1_ref, b1_ref, w2_ref, b2_ref, sel_lo_ref,
                    sel_hi_ref, wih_ref, whh_ref, blstm_ref, wfc_ref, bfc_ref,
                    out_ref, *, batch):
    f32 = jnp.float32
    B = batch
    H = whh_ref.shape[0]                 # Whh^T has shape (H, 4H)
    T = sel_lo_ref.shape[0] // B         # LSTM timesteps after pooling

    def shift_rows_up(a):
        # Full-block sublane shift: row r <- row r+1.  The wrapped last row
        # only lands in positions that are never consumed downstream.
        # (pltpu.roll(a, a.shape[0] - 1, 0) is the XLU drop-in for this.)
        return jnp.concatenate([a[1:, :], a[:1, :]], axis=0)

    # ---- load every weight / bias exactly once (hoisted out of the loop) ---
    x = x_ref[...]                                   # (B*L, Cin) channels-last
    w1 = w1_ref[...]; b1 = b1_ref[...]
    w2 = w2_ref[...]; b2 = b2_ref[...]
    sel_lo = sel_lo_ref[...]; sel_hi = sel_hi_ref[...]
    wih = wih_ref[...]; whh = whh_ref[...]; blstm = blstm_ref[...]
    wfc = wfc_ref[...]; bfc = bfc_ref[...]

    # ---- Conv1d #1 (k=2) + ReLU: one fused-K matmul over all B*L rows ------
    xcat = jnp.concatenate([x, shift_rows_up(x)], axis=1)          # (BL, 2Cin)
    h1 = jnp.maximum(jnp.dot(xcat, w1, preferred_element_type=f32) + b1, 0.0)

    # ---- Conv1d #2 (k=2) + ReLU --------------------------------------------
    h1cat = jnp.concatenate([h1, shift_rows_up(h1)], axis=1)       # (BL, 2C1)
    h2 = jnp.maximum(jnp.dot(h1cat, w2, preferred_element_type=f32) + b2, 0.0)

    # ---- MaxPool1d(2) + t-major reorder via one-hot MXU matmuls ------------
    # sel_lo / sel_hi pick rows b*L + 2t and b*L + 2t + 1, already ordered
    # (t, b).  The two dots are independent; the gather/reorder costs zero
    # slice/concat copies, and rows whose conv window crossed a batch
    # boundary are multiplied by exact zeros (never consumed).
    pooled = jnp.maximum(
        jnp.dot(sel_lo, h2, preferred_element_type=f32),
        jnp.dot(sel_hi, h2, preferred_element_type=f32))            # (T*B, C2)

    # ---- hoisted input-to-hidden gates for ALL timesteps (off serial path) -
    gx = jnp.dot(pooled, wih, preferred_element_type=f32) + blstm   # (T*B, 4H)

    # ---- LSTM recurrence: only h @ Whh remains on the serial chain ---------
    # H=16 is far below one MXU tile, so the per-step weight reload is tiny;
    # explicit pltpu.matmul_push_rhs residency only pays at production H.
    h = jnp.zeros((B, H), f32)
    c = jnp.zeros((B, H), f32)
    acc = jnp.zeros((B, out_ref.shape[1]), f32)      # lane-padded FC accum
    for t in range(T):                               # static unroll, T small
        gates = gx[t * B:(t + 1) * B, :] + jnp.dot(
            h, whh, preferred_element_type=f32)      # (B, 4H)
        sig = jax.nn.sigmoid(gates[:, 0:3 * H])      # gate layout [i, f, o, g]
        i_g = sig[:, 0:H]
        f_g = sig[:, H:2 * H]
        o_g = sig[:, 2 * H:3 * H]
        g_g = jnp.tanh(gates[:, 3 * H:4 * H])
        c = f_g * c + i_g * g_g
        h = o_g * jnp.tanh(c)
        # Per-step FC slab replaces the hs-concat + deferred Linear; this tiny
        # dot overlaps with the next step's recurrent matmul wait.
        acc = acc + jnp.dot(h, wfc[t * H:(t + 1) * H, :],
                            preferred_element_type=f32)

    out_ref[...] = acc + bfc                          # single full-block store


def cnn_lstm_forward(x, kp, *, kernel_size=(2, 2), pool=2):
    """Fused CNN-LSTM forward pass as one gridless Pallas call.

    Gridless is right for v5e/v6e at this size (a grid is a serial loop with
    ~0.35us/step overhead).  For production batches, tile the batch instead:
    grid=(pl.cdiv(B, TB),) with BlockSpecs indexing x/out over batch,
    dimension_semantics=("parallel",) (shards the 2 TensorCores on v7x, which
    also has only 64 MiB VMEM -> set pltpu.CompilerParams(vmem_limit_bytes=...)
    explicitly), cast conv/FC/ih weights + activations to bf16 to reach the
    native MXU rate, and switch the pooling gather to a per-tile reshape.
    """
    B, L, Cin = x.shape
    k1, k2 = kernel_size
    L2 = L - (k1 - 1) - (k2 - 1)            # length after the two valid convs
    T = (L2 - pool) // pool + 1             # length after MaxPool1d(2)
    # Static guard for the flat-row conv trick: pooling must never consume a
    # conv output whose window crossed a batch boundary.
    assert pool * T + (k1 - 1) + (k2 - 1) <= L, (
        "MaxPool would consume cross-batch rows; flat-row conv trick invalid")

    # One-hot selection matrices: MaxPool1d(2) row gather + (b,t)->(t,b)
    # reorder, executed on the MXU.  (Per-call constants; fine at small B.)
    sel_lo = np.zeros((T * B, B * L), np.float32)
    sel_hi = np.zeros((T * B, B * L), np.float32)
    for t in range(T):
        for b in range(B):
            sel_lo[t * B + b, b * L + pool * t] = 1.0
            sel_hi[t * B + b, b * L + pool * t + 1] = 1.0

    x_flat = x.reshape(B * L, Cin)          # channels stay on lanes: free
    args = (x_flat, kp["w1"], kp["b1"], kp["w2"], kp["b2"],
            jnp.asarray(sel_lo), jnp.asarray(sel_hi),
            kp["wih_t"], kp["whh_t"], kp["blstm"], kp["wfc_t"], kp["bfc"])
    out_pad = kp["bfc"].shape[1]
    out = pl.pallas_call(
        functools.partial(cnn_lstm_kernel, batch=B),
        out_shape=jax.ShapeDtypeStruct((B, out_pad), jnp.float32),
        in_specs=[pl.BlockSpec(memory_space=pltpu.MemorySpace.VMEM)
                  for _ in args],
        out_specs=pl.BlockSpec(memory_space=pltpu.MemorySpace.VMEM),
    )(*args)
    return out[:, :kp["out_dim"]]           # drop the lane padding host-side


def _reorder_gates(w, H):
    """PyTorch LSTM gate order [i, f, g, o] -> kernel order [i, f, o, g]."""
    return jnp.concatenate(
        [w[0:H], w[H:2 * H], w[3 * H:4 * H], w[2 * H:3 * H]], axis=0)


def init_params(key, input_size, seq_length, cnn_channels=(16, 16),
                kernel_size=(2, 2), hidden_size=16, steps=1, output_size=1):
    """Deterministic synthetic weights mimicking the module's init_weights()."""
    c1, c2 = cnn_channels
    k1, k2 = kernel_size
    assert k1 == 2 and k2 == 2, "fused-tap conv packing assumes kernel_size=2"
    ks = jax.random.split(key, 5)

    def kaiming(k, shape, fan_in):
        return jax.random.normal(k, shape, jnp.float32) * jnp.sqrt(2.0 / fan_in)

    def orthogonal(k, shape):
        a = jax.random.normal(k, shape, jnp.float32)
        q, r = jnp.linalg.qr(a)
        return (q * jnp.sign(jnp.diagonal(r))[None, :]).astype(jnp.float32)

    w1 = kaiming(ks[0], (c1, input_size, k1), input_size * k1)   # Conv1d OIW
    b1 = jnp.full((c1,), 0.01, jnp.float32)
    w2 = kaiming(ks[1], (c2, c1, k2), c1 * k2)
    b2 = jnp.full((c2,), 0.01, jnp.float32)

    wih = orthogonal(ks[2], (4 * hidden_size, c2))               # (4H, C2)
    whh = orthogonal(ks[3], (4 * hidden_size, hidden_size))      # (4H, H)
    bih = jnp.zeros((4 * hidden_size,), jnp.float32)
    bhh = jnp.zeros((4 * hidden_size,), jnp.float32)

    l_conv = seq_length - (k1 - 1) - (k2 - 1)
    l_out = (l_conv - 2) // 2 + 1
    fc_in = hidden_size * l_out
    out_dim = steps * output_size
    wfc = kaiming(ks[4], (out_dim, fc_in), fc_in)
    bfc = jnp.zeros((out_dim,), jnp.float32)

    ref = dict(w1=w1, b1=b1, w2=w2, b2=b2, wih=wih, whh=whh, bih=bih, bhh=bhh,
               wfc=wfc, bfc=bfc, hidden_size=hidden_size)

    H = hidden_size
    out_pad = ((out_dim + 127) // 128) * 128        # lane-dense output block
    wfc_t = jnp.zeros((fc_in, out_pad), jnp.float32).at[:, :out_dim].set(wfc.T)
    bfc_p = jnp.zeros((1, out_pad), jnp.float32).at[0, :out_dim].set(bfc)
    kern = dict(
        # fused conv taps: [w_tap0; w_tap1] -> one matmul per conv layer
        w1=jnp.concatenate([w1[:, :, 0].T, w1[:, :, 1].T], axis=0),  # (2Cin,C1)
        b1=b1[None, :],
        w2=jnp.concatenate([w2[:, :, 0].T, w2[:, :, 1].T], axis=0),  # (2C1,C2)
        b2=b2[None, :],
        wih_t=jnp.asarray(_reorder_gates(wih, H).T),                 # (C2, 4H)
        whh_t=jnp.asarray(_reorder_gates(whh, H).T),                 # (H, 4H) f32
        blstm=_reorder_gates(bih + bhh, H)[None, :],
        wfc_t=wfc_t, bfc=bfc_p, out_dim=out_dim,
    )
    return kern, ref


def reference_forward(x, rp):
    """Independent pure-JAX reference matching the PyTorch forward pass."""
    H = rp["hidden_size"]
    xn = jnp.transpose(x, (0, 2, 1))                 # x.permute(0, 2, 1) -> NCW
    y = jax.lax.conv_general_dilated(
        xn, rp["w1"], window_strides=(1,), padding="VALID",
        dimension_numbers=("NCH", "OIH", "NCH")) + rp["b1"][None, :, None]
    y = jax.nn.relu(y)
    y = jax.lax.conv_general_dilated(
        y, rp["w2"], window_strides=(1,), padding="VALID",
        dimension_numbers=("NCH", "OIH", "NCH")) + rp["b2"][None, :, None]
    y = jax.nn.relu(y)
    B, C, L2 = y.shape
    y = y[:, :, :(L2 // 2) * 2].reshape(B, C, L2 // 2, 2).max(-1)  # MaxPool1d(2)
    y = jnp.transpose(y, (0, 2, 1))                  # (B, T, C)  (dropout p=0)

    def step(carry, xt):
        h, c = carry
        gates = xt @ rp["wih"].T + h @ rp["whh"].T + rp["bih"] + rp["bhh"]
        i = jax.nn.sigmoid(gates[:, 0:H])
        f = jax.nn.sigmoid(gates[:, H:2 * H])
        g = jnp.tanh(gates[:, 2 * H:3 * H])
        o = jax.nn.sigmoid(gates[:, 3 * H:4 * H])
        c = f * c + i * g
        h = o * jnp.tanh(c)
        return (h, c), h

    h0 = jnp.zeros((B, H), jnp.float32)
    c0 = jnp.zeros((B, H), jnp.float32)
    _, hs = jax.lax.scan(step, (h0, c0), jnp.transpose(y, (1, 0, 2)))
    flat = jnp.transpose(hs, (1, 0, 2)).reshape(B, -1)   # flatten(start_dim=1)
    return flat @ rp["wfc"].T + rp["bfc"]


if __name__ == "__main__":
    key = jax.random.PRNGKey(0)
    kx, kw = jax.random.split(key)

    B, seq_length, input_size = 2, 8, 4
    x = jax.random.normal(kx, (B, seq_length, input_size), jnp.float32)

    kern_params, ref_params = init_params(kw, input_size, seq_length)

    out = cnn_lstm_forward(x, kern_params)
    out = jax.block_until_ready(out)

    ref = reference_forward(x, ref_params)
    np.testing.assert_allclose(np.asarray(out), np.asarray(ref),
                               rtol=2e-2, atol=2e-2)
    print("KERNEL_OK")
</pallas_src>

<mosaic_0001>
module attributes {stable_mosaic.version = 11 : i64} {
  func.func @cnn_lstm_kernel(%arg0: memref<16x4xf32, #tpu.memory_space<vmem>>, %arg1: memref<8x16xf32, #tpu.memory_space<vmem>>, %arg2: memref<1x16xf32, #tpu.memory_space<vmem>>, %arg3: memref<32x16xf32, #tpu.memory_space<vmem>>, %arg4: memref<1x16xf32, #tpu.memory_space<vmem>>, %arg5: memref<6x16xf32, #tpu.memory_space<vmem>>, %arg6: memref<6x16xf32, #tpu.memory_space<vmem>>, %arg7: memref<16x64xf32, #tpu.memory_space<vmem>>, %arg8: memref<16x64xf32, #tpu.memory_space<vmem>>, %arg9: memref<1x64xf32, #tpu.memory_space<vmem>>, %arg10: memref<48x128xf32, #tpu.memory_space<vmem>>, %arg11: memref<1x128xf32, #tpu.memory_space<vmem>>, %arg12: memref<2x128xf32, #tpu.memory_space<vmem>>) attributes {dimension_semantics = [], scalar_prefetch = 0 : i64, scratch_operands = 0 : i64, tpu.core_type = #tpu.core_type<tc>} {
    %c0 = arith.constant 0 : index
    %c0_0 = arith.constant 0 : index
    %0 = vector.load %arg0[%c0, %c0_0] : memref<16x4xf32, #tpu.memory_space<vmem>>, vector<16x4xf32>
    %c0_1 = arith.constant 0 : index
    %c0_2 = arith.constant 0 : index
    %1 = vector.load %arg1[%c0_1, %c0_2] : memref<8x16xf32, #tpu.memory_space<vmem>>, vector<8x16xf32>
    %c0_3 = arith.constant 0 : index
    %c0_4 = arith.constant 0 : index
    %2 = vector.load %arg2[%c0_3, %c0_4] : memref<1x16xf32, #tpu.memory_space<vmem>>, vector<1x16xf32>
    %c0_5 = arith.constant 0 : index
    %c0_6 = arith.constant 0 : index
    %3 = vector.load %arg3[%c0_5, %c0_6] : memref<32x16xf32, #tpu.memory_space<vmem>>, vector<32x16xf32>
    %c0_7 = arith.constant 0 : index
    %c0_8 = arith.constant 0 : index
    %4 = vector.load %arg4[%c0_7, %c0_8] : memref<1x16xf32, #tpu.memory_space<vmem>>, vector<1x16xf32>
    %c0_9 = arith.constant 0 : index
    %c0_10 = arith.constant 0 : index
    %5 = vector.load %arg5[%c0_9, %c0_10] : memref<6x16xf32, #tpu.memory_space<vmem>>, vector<6x16xf32>
    %c0_11 = arith.constant 0 : index
    %c0_12 = arith.constant 0 : index
    %6 = vector.load %arg6[%c0_11, %c0_12] : memref<6x16xf32, #tpu.memory_space<vmem>>, vector<6x16xf32>
    %c0_13 = arith.constant 0 : index
    %c0_14 = arith.constant 0 : index
    %7 = vector.load %arg7[%c0_13, %c0_14] : memref<16x64xf32, #tpu.memory_space<vmem>>, vector<16x64xf32>
    %c0_15 = arith.constant 0 : index
    %c0_16 = arith.constant 0 : index
    %8 = vector.load %arg8[%c0_15, %c0_16] : memref<16x64xf32, #tpu.memory_space<vmem>>, vector<16x64xf32>
    %c0_17 = arith.constant 0 : index
    %c0_18 = arith.constant 0 : index
    %9 = vector.load %arg9[%c0_17, %c0_18] : memref<1x64xf32, #tpu.memory_space<vmem>>, vector<1x64xf32>
    %c0_19 = arith.constant 0 : index
    %c0_20 = arith.constant 0 : index
    %10 = vector.load %arg10[%c0_19, %c0_20] : memref<48x128xf32, #tpu.memory_space<vmem>>, vector<48x128xf32>
    %c0_21 = arith.constant 0 : index
    %c0_22 = arith.constant 0 : index
    %11 = vector.load %arg11[%c0_21, %c0_22] : memref<1x128xf32, #tpu.memory_space<vmem>>, vector<1x128xf32>
    %12 = vector.extract_strided_slice %0 {offsets = [1, 0], sizes = [15, 4], strides = [1, 1]} : vector<16x4xf32> to vector<15x4xf32>
    %13 = vector.extract_strided_slice %0 {offsets = [0, 0], sizes = [1, 4], strides = [1, 1]} : vector<16x4xf32> to vector<1x4xf32>
    %14 = tpu.concatenate %12, %13 in 0 : vector<15x4xf32>, vector<1x4xf32> -> vector<16x4xf32>
    %15 = tpu.concatenate %0, %14 in 1 : vector<16x4xf32>, vector<16x4xf32> -> vector<16x8xf32>
    %cst = arith.constant dense<0.000000e+00> : vector<16x16xf32>
    %16 = tpu.matmul %15, %1, %cst {dimension_numbers = #tpu.dot_dimension_numbers<[1], [0], [0], [1], [0, 0, 1, 1], [], []>} : vector<16x8xf32>, vector<8x16xf32>, vector<16x16xf32> -> vector<16x16xf32>
    %17 = vector.broadcast %2 : vector<1x16xf32> to vector<16x16xf32>
    %18 = arith.addf %16, %17 : vector<16x16xf32>
    %cst_23 = arith.constant 0.000000e+00 : f32
    %19 = vector.broadcast %cst_23 : f32 to vector<16x16xf32>
    %20 = arith.maximumf %18, %19 : vector<16x16xf32>
    %21 = vector.extract_strided_slice %20 {offsets = [1, 0], sizes = [15, 16], strides = [1, 1]} : vector<16x16xf32> to vector<15x16xf32>
    %22 = vector.extract_strided_slice %20 {offsets = [0, 0], sizes = [1, 16], strides = [1, 1]} : vector<16x16xf32> to vector<1x16xf32>
    %23 = tpu.concatenate %21, %22 in 0 : vector<15x16xf32>, vector<1x16xf32> -> vector<16x16xf32>
    %24 = tpu.concatenate %20, %23 in 1 : vector<16x16xf32>, vector<16x16xf32> -> vector<16x32xf32>
    %cst_24 = arith.constant dense<0.000000e+00> : vector<16x16xf32>
    %25 = tpu.matmul %24, %3, %cst_24 {dimension_numbers = #tpu.dot_dimension_numbers<[1], [0], [0], [1], [0, 0, 1, 1], [], []>} : vector<16x32xf32>, vector<32x16xf32>, vector<16x16xf32> -> vector<16x16xf32>
    %26 = vector.broadcast %4 : vector<1x16xf32> to vector<16x16xf32>
    %27 = arith.addf %25, %26 : vector<16x16xf32>
    %cst_25 = arith.constant 0.000000e+00 : f32
    %28 = vector.broadcast %cst_25 : f32 to vector<16x16xf32>
    %29 = arith.maximumf %27, %28 : vector<16x16xf32>
    %cst_26 = arith.constant dense<0.000000e+00> : vector<6x16xf32>
    %30 = tpu.matmul %5, %29, %cst_26 {dimension_numbers = #tpu.dot_dimension_numbers<[1], [0], [0], [1], [0, 0, 1, 1], [], []>} : vector<6x16xf32>, vector<16x16xf32>, vector<6x16xf32> -> vector<6x16xf32>
    %cst_27 = arith.constant dense<0.000000e+00> : vector<6x16xf32>
    %31 = tpu.matmul %6, %29, %cst_27 {dimension_numbers = #tpu.dot_dimension_numbers<[1], [0], [0], [1], [0, 0, 1, 1], [], []>} : vector<6x16xf32>, vector<16x16xf32>, vector<6x16xf32> -> vector<6x16xf32>
    %32 = arith.maximumf %30, %31 : vector<6x16xf32>
    %cst_28 = arith.constant dense<0.000000e+00> : vector<6x64xf32>
    %33 = tpu.matmul %32, %7, %cst_28 {dimension_numbers = #tpu.dot_dimension_numbers<[1], [0], [0], [1], [0, 0, 1, 1], [], []>} : vector<6x16xf32>, vector<16x64xf32>, vector<6x64xf32> -> vector<6x64xf32>
    %34 = vector.broadcast %9 : vector<1x64xf32> to vector<6x64xf32>
    %35 = arith.addf %33, %34 : vector<6x64xf32>
    %cst_29 = arith.constant 0.000000e+00 : f32
    %36 = vector.broadcast %cst_29 : f32 to vector<2x16xf32>
    %cst_30 = arith.constant 0.000000e+00 : f32
    %37 = vector.broadcast %cst_30 : f32 to vector<2x16xf32>
    %cst_31 = arith.constant 0.000000e+00 : f32
    %38 = vector.broadcast %cst_31 : f32 to vector<2x128xf32>
    %39 = vector.extract_strided_slice %35 {offsets = [0, 0], sizes = [2, 64], strides = [1, 1]} : vector<6x64xf32> to vector<2x64xf32>
    %cst_32 = arith.constant dense<0.000000e+00> : vector<2x64xf32>
    %40 = tpu.matmul %36, %8, %cst_32 {dimension_numbers = #tpu.dot_dimension_numbers<[1], [0], [0], [1], [0, 0, 1, 1], [], []>} : vector<2x16xf32>, vector<16x64xf32>, vector<2x64xf32> -> vector<2x64xf32>
    %41 = arith.addf %39, %40 : vector<2x64xf32>
    %42 = vector.extract_strided_slice %41 {offsets = [0, 0], sizes = [2, 48], strides = [1, 1]} : vector<2x64xf32> to vector<2x48xf32>
    %43 = arith.negf %42 : vector<2x48xf32>
    %44 = math.exp %43 : vector<2x48xf32>
    %cst_33 = arith.constant 1.000000e+00 : f32
    %45 = vector.broadcast %cst_33 : f32 to vector<2x48xf32>
    %46 = arith.addf %45, %44 : vector<2x48xf32>
    %47 = arith.divf %45, %46 : vector<2x48xf32>
    %48 = vector.extract_strided_slice %47 {offsets = [0, 0], sizes = [2, 16], strides = [1, 1]} : vector<2x48xf32> to vector<2x16xf32>
    %49 = vector.extract_strided_slice %47 {offsets = [0, 16], sizes = [2, 16], strides = [1, 1]} : vector<2x48xf32> to vector<2x16xf32>
    %50 = vector.extract_strided_slice %47 {offsets = [0, 32], sizes = [2, 16], strides = [1, 1]} : vector<2x48xf32> to vector<2x16xf32>
    %51 = vector.extract_strided_slice %41 {offsets = [0, 48], sizes = [2, 16], strides = [1, 1]} : vector<2x64xf32> to vector<2x16xf32>
    %52 = math.tanh %51 : vector<2x16xf32>
    %53 = arith.mulf %49, %37 : vector<2x16xf32>
    %54 = arith.mulf %48, %52 : vector<2x16xf32>
    %55 = arith.addf %53, %54 : vector<2x16xf32>
    %56 = math.tanh %55 : vector<2x16xf32>
    %57 = arith.mulf %50, %56 : vector<2x16xf32>
    %58 = vector.extract_strided_slice %10 {offsets = [0, 0], sizes = [16, 128], strides = [1, 1]} : vector<48x128xf32> to vector<16x128xf32>
    %cst_34 = arith.constant dense<0.000000e+00> : vector<2x128xf32>
    %59 = tpu.matmul %57, %58, %cst_34 {dimension_numbers = #tpu.dot_dimension_numbers<[1], [0], [0], [1], [0, 0, 1, 1], [], []>} : vector<2x16xf32>, vector<16x128xf32>, vector<2x128xf32> -> vector<2x128xf32>
    %60 = arith.addf %38, %59 : vector<2x128xf32>
    %61 = vector.extract_strided_slice %35 {offsets = [2, 0], sizes = [2, 64], strides = [1, 1]} : vector<6x64xf32> to vector<2x64xf32>
    %cst_35 = arith.constant dense<0.000000e+00> : vector<2x64xf32>
    %62 = tpu.matmul %57, %8, %cst_35 {dimension_numbers = #tpu.dot_dimension_numbers<[1], [0], [0], [1], [0, 0, 1, 1], [], []>} : vector<2x16xf32>, vector<16x64xf32>, vector<2x64xf32> -> vector<2x64xf32>
    %63 = arith.addf %61, %62 : vector<2x64xf32>
    %64 = vector.extract_strided_slice %63 {offsets = [0, 0], sizes = [2, 48], strides = [1, 1]} : vector<2x64xf32> to vector<2x48xf32>
    %65 = arith.negf %64 : vector<2x48xf32>
    %66 = math.exp %65 : vector<2x48xf32>
    %cst_36 = arith.constant 1.000000e+00 : f32
    %67 = vector.broadcast %cst_36 : f32 to vector<2x48xf32>
    %68 = arith.addf %67, %66 : vector<2x48xf32>
    %69 = arith.divf %67, %68 : vector<2x48xf32>
    %70 = vector.extract_strided_slice %69 {offsets = [0, 0], sizes = [2, 16], strides = [1, 1]} : vector<2x48xf32> to vector<2x16xf32>
    %71 = vector.extract_strided_slice %69 {offsets = [0, 16], sizes = [2, 16], strides = [1, 1]} : vector<2x48xf32> to vector<2x16xf32>
    %72 = vector.extract_strided_slice %69 {offsets = [0, 32], sizes = [2, 16], strides = [1, 1]} : vector<2x48xf32> to vector<2x16xf32>
    %73 = vector.extract_strided_slice %63 {offsets = [0, 48], sizes = [2, 16], strides = [1, 1]} : vector<2x64xf32> to vector<2x16xf32>
    %74 = math.tanh %73 : vector<2x16xf32>
    %75 = arith.mulf %71, %55 : vector<2x16xf32>
    %76 = arith.mulf %70, %74 : vector<2x16xf32>
    %77 = arith.addf %75, %76 : vector<2x16xf32>
    %78 = math.tanh %77 : vector<2x16xf32>
    %79 = arith.mulf %72, %78 : vector<2x16xf32>
    %80 = vector.extract_strided_slice %10 {offsets = [16, 0], sizes = [16, 128], strides = [1, 1]} : vector<48x128xf32> to vector<16x128xf32>
    %cst_37 = arith.constant dense<0.000000e+00> : vector<2x128xf32>
    %81 = tpu.matmul %79, %80, %cst_37 {dimension_numbers = #tpu.dot_dimension_numbers<[1], [0], [0], [1], [0, 0, 1, 1], [], []>} : vector<2x16xf32>, vector<16x128xf32>, vector<2x128xf32> -> vector<2x128xf32>
    %82 = arith.addf %60, %81 : vector<2x128xf32>
    %83 = vector.extract_strided_slice %35 {offsets = [4, 0], sizes = [2, 64], strides = [1, 1]} : vector<6x64xf32> to vector<2x64xf32>
    %cst_38 = arith.constant dense<0.000000e+00> : vector<2x64xf32>
    %84 = tpu.matmul %79, %8, %cst_38 {dimension_numbers = #tpu.dot_dimension_numbers<[1], [0], [0], [1], [0, 0, 1, 1], [], []>} : vector<2x16xf32>, vector<16x64xf32>, vector<2x64xf32> -> vector<2x64xf32>
    %85 = arith.addf %83, %84 : vector<2x64xf32>
    %86 = vector.extract_strided_slice %85 {offsets = [0, 0], sizes = [2, 48], strides = [1, 1]} : vector<2x64xf32> to vector<2x48xf32>
    %87 = arith.negf %86 : vector<2x48xf32>
    %88 = math.exp %87 : vector<2x48xf32>
    %cst_39 = arith.constant 1.000000e+00 : f32
    %89 = vector.broadcast %cst_39 : f32 to vector<2x48xf32>
    %90 = arith.addf %89, %88 : vector<2x48xf32>
    %91 = arith.divf %89, %90 : vector<2x48xf32>
    %92 = vector.extract_strided_slice %91 {offsets = [0, 0], sizes = [2, 16], strides = [1, 1]} : vector<2x48xf32> to vector<2x16xf32>
    %93 = vector.extract_strided_slice %91 {offsets = [0, 16], sizes = [2, 16], strides = [1, 1]} : vector<2x48xf32> to vector<2x16xf32>
    %94 = vector.extract_strided_slice %91 {offsets = [0, 32], sizes = [2, 16], strides = [1, 1]} : vector<2x48xf32> to vector<2x16xf32>
    %95 = vector.extract_strided_slice %85 {offsets = [0, 48], sizes = [2, 16], strides = [1, 1]} : vector<2x64xf32> to vector<2x16xf32>
    %96 = math.tanh %95 : vector<2x16xf32>
    %97 = arith.mulf %93, %77 : vector<2x16xf32>
    %98 = arith.mulf %92, %96 : vector<2x16xf32>
    %99 = arith.addf %97, %98 : vector<2x16xf32>
    %100 = math.tanh %99 : vector<2x16xf32>
    %101 = arith.mulf %94, %100 : vector<2x16xf32>
    %102 = vector.extract_strided_slice %10 {offsets = [32, 0], sizes = [16, 128], strides = [1, 1]} : vector<48x128xf32> to vector<16x128xf32>
    %cst_40 = arith.constant dense<0.000000e+00> : vector<2x128xf32>
    %103 = tpu.matmul %101, %102, %cst_40 {dimension_numbers = #tpu.dot_dimension_numbers<[1], [0], [0], [1], [0, 0, 1, 1], [], []>} : vector<2x16xf32>, vector<16x128xf32>, vector<2x128xf32> -> vector<2x128xf32>
    %104 = arith.addf %82, %103 : vector<2x128xf32>
    %105 = vector.broadcast %11 : vector<1x128xf32> to vector<2x128xf32>
    %106 = arith.addf %104, %105 : vector<2x128xf32>
    %c0_41 = arith.constant 0 : index
    %c0_42 = arith.constant 0 : index
    %107 = vector.load %arg12[%c0_41, %c0_42] : memref<2x128xf32, #tpu.memory_space<vmem>>, vector<2x128xf32>
    tpu.vector_store %arg12[%c0_41, %c0_42], %106 {strides = array<i32>} : memref<2x128xf32, #tpu.memory_space<vmem>>, vector<2x128xf32>,
    return
  }
}

</mosaic_0001>

<bundles_post_ra>
// kernel: tpu_custom_call.1
= control target key start
LH: loop header
LB: loop body
LE: loop exit
PB: predicated region body
PF: predicated region fallthrough
CT: control target
= control target key end

     0   :  { %17 = vsyncpa [#allocation3], 0  ;;  %s1599_s0 = inlined_call_operand.vmem [shape: f32[16,4], index: 0, kind: input, shape index: {}]   ;;  %s1600_s1 = inlined_call_operand.vmem [shape: f32[8,16], index: 1, kind: input, shape index: {}]   ;;  %s1601_s2 = inlined_call_operand.vmem [shape: f32[1,16], index: 2, kind: input, shape index: {}]   ;;  %s1602_s3 = inlined_call_operand.vmem [shape: f32[32,16], index: 3, kind: input, shape index: {}]   ;;  %s1603_s4 = inlined_call_operand.vmem [shape: f32[1,16], index: 4, kind: input, shape index: {}]   ;;  %s1604_s5 = inlined_call_operand.hbm [shape: f32[6,16], index: 5, kind: input, shape index: {}]   ;;  %s1605_s6 = inlined_call_operand.hbm [shape: f32[6,16], index: 6, kind: input, shape index: {}]   ;;  %s1606_s7 = inlined_call_operand.vmem [shape: f32[16,64], index: 7, kind: input, shape index: {}]   ;;  %s1607_s8 = inlined_call_operand.vmem [shape: f32[16,64], index: 8, kind: input, shape index: {}]   ;;  %s1608_s9 = inlined_call_operand.vmem [shape: f32[1,64], index: 9, kind: input, shape index: {}]   ;;  %s1609_s10 = inlined_call_operand.vmem [shape: f32[48,128], index: 10, kind: input, shape index: {}]   ;;  %s1610_s11 = inlined_call_operand.vmem [shape: f32[1,128], index: 11, kind: input, shape index: {}]   ;;  %s1611_s12 = inlined_call_operand.hbm [shape: f32[2,128], index: 12, kind: output, shape index: {}]  }
   0x1   :  { %18 = vsyncpa [#allocation6], 0 }
   0x2   :  { %19 = vsyncpa [#allocation4], 0  ;;  %s1359_s21 = smov [#allocation2]   ;;  %s1360_s23 = smov [#allocation5]  }
   0x3   :  { %s36_s22 = sshll.u32 %s1359_s21, 4  ;;  %s46_s24 = sshll.u32 %s1360_s23, 4  ;;  %s37_s22 = int_to_ptr.vmem [resolvable:$true] %s36_s22  ;;  %s47_s24 = int_to_ptr.vmem [resolvable:$true] %s46_s24 }
   0x4   :  { %s1287_s27 = scalar_lea.hbm %s1604_s5, 128 }
   0x5   :  { %p1288_p0 = scmp.ne.s32.totalorder %s1604_s5, %s1287_s27  ;;  %p1291_p1 = scmp.lt.u32.totalorder %s1287_s27, %s1604_s5 }
   0x7   :  { %p1293_p2 = pnand %p1291_p1, %p1288_p0 }
   0x9   :  { %1296 = shalt.err (!%p1293_p2)
}
   0xa   :  { %s1297_s14 = scalar_lea.vmem %s37_s22, 128  ;;  %p1302_p4 = scmp.lt.s32.totalorder %s37_s22, %s37_s22 }
   0xb   :  { %p1298_p3 = scmp.ne.s32.totalorder %s37_s22, %s1297_s14  ;;  %p1303_p5 = scmp.lt.s32.totalorder %s1297_s14, %s1297_s14 }
   0xd   :  { %p1304_p6 = por %p1303_p5, %p1302_p4 }
   0xf   :  { %p1305_p7 = pnand %p1304_p6, %p1298_p3 }
  0x11   :  { %1308 = shalt.err (!%p1305_p7)
}
  0x12   :  { %39 = dma.hbm_to_vmem [thread:$0]  %s1604_s5, 128, %s37_s22, [#allocation3]  }
  0x13   :  { %s1309_s19 = scalar_lea.hbm %s1605_s6, 128 }
  0x14   :  { %p1310_p8 = scmp.ne.s32.totalorder %s1605_s6, %s1309_s19  ;;  %p1313_p9 = scmp.lt.u32.totalorder %s1309_s19, %s1605_s6 }
  0x16   :  { %p1315_p10 = pnand %p1313_p9, %p1310_p8 }
  0x18   :  { %1318 = shalt.err (!%p1315_p10)
}
  0x19   :  { %s1319_s26 = scalar_lea.vmem %s47_s24, 128  ;;  %p1324_p12 = scmp.lt.s32.totalorder %s47_s24, %s47_s24 }
  0x1a   :  { %p1320_p11 = scmp.ne.s32.totalorder %s47_s24, %s1319_s26  ;;  %p1325_p13 = scmp.lt.s32.totalorder %s1319_s26, %s1319_s26 }
  0x1c   :  { %p1326_p0 = por %p1325_p13, %p1324_p12 }
  0x1e   :  { %p1327_p1 = pnand %p1326_p0, %p1320_p11 }
  0x20   :  { %1330 = shalt.err (!%p1327_p1)
}
  0x21   :  { %49 = dma.hbm_to_vmem [thread:$0]  %s1605_s6, 128, %s47_s24, [#allocation6]  }
  0x22   :  { %1353 = dma.done.wait [#allocation3], 128  }
  0x23   :  { %1354 = vsyncadd [#allocation3], 4294967168 }
  0x24   :  { %1355 = dma.done.wait [#allocation6], 128  }
  0x25   :  { %1356 = vsyncadd [#allocation6], 4294967168  ;;  %v66_v0 = vld [vmem:[%s1599_s0] sm:$0xff]  ;;  %v67_v1 = vld [vmem:[%s1599_s0 + $0x8] sm:$0xff]  ;;  %vm91_vm0 = vcmask 1046528   ;;  %s1361_s6 = smov 4  }
  0x26   :  { %v68_v2 = vld [vmem:[%s1600_s1] sm:$0xff]  ;;  %v92_v3 = vrot.slane %v66_v0, 1  ;;  %v93_v4 = vrot.slane %v67_v1, 1  ;;  %vm105_vm1 = vcmask 31744   ;;  %vm114_vm2 = vcmask 64512   ;;  %v71_v12 = vld [vmem:[%s1602_s3 + $0x8] sm:$0xff] }
  0x27   :  { %1139 = vmatprep.subr.mxu0 %v68_v2  ;;  %v70_v11 = vld [vmem:[%s1602_s3] sm:$0xff]  ;;  %v72_v14 = vld [vmem:[%s1602_s3 + $0x10] sm:$0xff]  ;;  %v73_v15 = vld [vmem:[%s1602_s3 + $0x18] sm:$0xff]  ;;  %s1362_s23 = smov 16   ;;  %vm213_vm3 = vcmask 130048   ;;  %vm222_vm4 = vcmask 261120  }
  0x28   :  { %1140 = vmatpush3.msra.mxu0 %v68_v2  ;;  %v94_v5 = vsel %vm91_vm0, %v92_v3, %v93_v4  ;;  %v97_v6 = vsel %vm91_vm0, %v93_v4, %v92_v3  ;;  %v1218_v13 = vpack.c.bf16 %v71_v12, %v70_v11  ;;  %v1222_v16 = vpack.c.bf16 %v73_v15, %v72_v14  ;;  %v1084_v17 = vld [vmem:[%s1601_s2] ss:$0 sm:$0xff]  ;;  %v76_v43 = vld [vmem:[#allocation5] sm:$0x3f]  ;;  %s1366_s30 = smov 80   ;;  %s1368_s3 = smov [#allocation7]  }
  0x29   :  { %99 = vrot.lane.b32.xlu0 %v94_v5, %s1361_s6  ;;  %v1363_v32 = vmov 0.0|0.0   ;;  %vm1364_vm5 = vmmov 0   ;;  %v1365_v33 = vmov 0.0   ;;  %v1087_v34 = vld [vmem:[%s1603_s4] ss:$0 sm:$0xff]  ;;  %v78_v45 = vld [vmem:[%s1606_s7 + $0x8] sm:$0xff] }
  0x2a   :  { %1219 = vmatprep.subr.bf16.mxu1 %v1218_v13  ;;  %1226 = vmatprep.subr.bf16.mxu0 %v1363_v32  ;;  %v75_v42 = vld [vmem:[#allocation2] sm:$0x3f]  ;;  %v80_v48 = vld [vmem:[%s1607_s8 + $0x8] sm:$0xff] }
  0x2b   :  { %1221 = vmatpush3.bf16.msra.mxu1 %v1218_v13  ;;  %v77_v44 = vld [vmem:[%s1606_s7] sm:$0xff]  ;;  %v83_v12 = vld [vmem:[%s1609_s10 + $0x8] sm:$0xff] }
  0x2c   :  { %1223 = vmatprep.subr.bf16.mxu1 %v1222_v16  ;;  %v1233_v46 = vpack.c.bf16 %v78_v45, %v77_v44  ;;  %v79_v47 = vld [vmem:[%s1607_s8] sm:$0xff] }
  0x2d   :  { %101 = vrot.lane.b32.xlu0 %v97_v6, %s1361_s6  ;;  %v1519_v49 = vpack.c.bf16 %v80_v48, %v79_v47  ;;  %v1092_v57 = vld [vmem:[%s1608_s9] ss:$0 sm:$0xff]  ;;  %s1367_s9 = smov 96  }
  0x2e   :  { %v82_v11 = vld [vmem:[%s1609_s10] sm:$0xff] }
  0x2f   :  { %1225 = vmatpush3.bf16.msra.mxu1 %v1222_v16  ;;  %v1245_v13 = vpack.c.bf16 %v83_v12, %v82_v11 }
  0x30   :  { %1232 = vmatprep.subr.bf16.mxu1 %v1363_v32 }
  0x9b   :  { %v100_v7 = vpop.permute.xlu0 %99 }
  0x9c   :  { %v106_v8 = vsel %vm105_vm1, %v66_v0, %v100_v7 }
  0x9d   :  { %1141 = vmatprep.mubr.msk.f32.mxu0 %vm114_vm2, %v106_v8 }
  0x9f   :  { %v102_v9 = vpop.permute.xlu0 %101 }
  0xa0   :  { %v107_v10 = vsel %vm105_vm1, %v67_v1, %v102_v9 }
  0xa1   :  { %1142 = vmatmul.mubr.msk.f32.vlgmr.msra.gmra.mrb[0].mxu0 %vm114_vm2, %v107_v10 }
  0xa2   :  { %1159 = vmatprep.mubr.msk.f32.mxu0 %vm1364_vm5, %v1365_v33 }
 0x174   :  { %v1143_v18 = vpop.f32.mrb[0].mxu0 }
 0x175   :  { %v193_v19 = vadd.f32 %v1143_v18, %v1084_v17  ;;  %v187_v20 = vpop.f32.mrb[1].mxu0 }
 0x176   :  { %v188_v21 = vadd.f32 %v1084_v17, %v187_v20 }
 0x177   :  { %v197_v22 = vmax.f32 %v193_v19, 0.0 }
 0x178   :  { %v196_v23 = vmax.f32 %v188_v21, 0.0 }
 0x179   :  { %v201_v24 = vrot.slane %v197_v22, 1 }
 0x17a   :  { %v200_v25 = vrot.slane %v196_v23, 1 }
 0x17c   :  { %v202_v26 = vsel %vm91_vm0, %v200_v25, %v201_v24  ;;  %v205_v27 = vsel %vm91_vm0, %v201_v24, %v200_v25 }
 0x17d   :  { %207 = vrot.lane.b32.xlu1 %v202_v26, %s1362_s23 }
 0x181   :  { %209 = vrot.lane.b32.xlu1 %v205_v27, %s1362_s23 }
 0x1ef   :  { %v208_v28 = vpop.permute.xlu1 %207 }
 0x1f0   :  { %v214_v29 = vsel %vm213_vm3, %v196_v23, %v208_v28 }
 0x1f1   :  { %1152 = vmatprep.mubr.msk.f32.mxu1 %vm222_vm4, %v214_v29 }
 0x1f3   :  { %v210_v30 = vpop.permute.xlu1 %209 }
 0x1f4   :  { %v215_v31 = vsel %vm213_vm3, %v197_v22, %v210_v30 }
 0x1f5   :  { %1153 = vmatmul.mubr.msk.f32.vlgmr.msra.gmra.mrb[0].mxu1 %vm222_vm4, %v215_v31 }
 0x1f6   :  { %1173 = vmatprep.mubr.msk.f32.mxu1 %vm1364_vm5, %v1365_v33  ;;  %1234 = vmatpush3.bf16.msra.mxu1 %v1233_v46 }
 0x1f7   :  { %1238 = vmatprep.subr.bf16.mxu1 %v1363_v32 }
 0x2c8   :  { %v1154_v35 = vpop.f32.mrb[0].mxu1 }
 0x2c9   :  { %v301_v36 = vadd.f32 %v1154_v35, %v1087_v34  ;;  %v295_v37 = vpop.f32.mrb[1].mxu1  ;;  %v85_v35 = vld [vmem:[%s1609_s10 + $0x18] sm:$0xff] }
 0x2ca   :  { %v296_v38 = vadd.f32 %v1087_v34, %v295_v37  ;;  %v84_v34 = vld [vmem:[%s1609_s10 + $0x10] sm:$0xff] }
 0x2cb   :  { %v305_v39 = vmax.f32 %v301_v36, 0.0  ;;  %v1242_v36 = vpack.c.bf16 %v85_v35, %v84_v34 }
 0x2cc   :  { %v304_v40 = vmax.f32 %v296_v38, 0.0 }
 0x2ce   :  { %v1227_v41 = vpack.c.bf16 %v305_v39, %v304_v40 }
 0x2d0   :  { %1228 = vmatpush3.bf16.msra.mxu0 %v1227_v41 }
 0x2d1   :  { %1229 = vmatprep.subr.bf16.mxu0 %v1363_v32 }
 0x2d3   :  { %1160 = vmatmul.mubr.msk.f32.vlgmr.msra.gmra.mrb[2].mxu0 %vm213_vm3, %v75_v42 }
 0x2d4   :  { %1231 = vmatpush3.bf16.msra.mxu0 %v1227_v41  ;;  %1166 = vmatprep.mubr.msk.f32.mxu0 %vm1364_vm5, %v1365_v33 }
 0x2d5   :  { %1235 = vmatprep.subr.bf16.mxu0 %v1363_v32 }
 0x2d7   :  { %1167 = vmatmul.mubr.msk.f32.vlgmr.msra.gmra.mrb[4].mxu0 %vm213_vm3, %v76_v43 }
 0x2d8   :  { %1180 = vmatprep.mubr.msk.f32.mxu0 %vm1364_vm5, %v1365_v33  ;;  %1237 = vmatpush3.bf16.msra.mxu0 %v1519_v49 }
 0x2d9   :  { %1241 = vmatprep.subr.bf16.mxu0 %v1363_v32 }
 0x2db   :  { %1181 = vmatmul.mubr.f32.vlgmr.msra.gmra.mrb[6].mxu0 %v1365_v33 }
 0x2dc   :  { %1194 = vmatprep.mubr.msk.f32.mxu0 %vm1364_vm5, %v1365_v33  ;;  %1243 = vmatpush3.bf16.msra.mxu0 %v1242_v36 }
 0x2dd   :  { %1247 = vmatprep.subr.bf16.mxu0 %v1363_v32 }
 0x3a6   :  { %v375_v50 = vpop.f32.mrb[2].mxu0 }
 0x3a7   :  { %v1161_v51 = vpop.f32.mrb[3].mxu0 }
 0x3aa   :  { %v448_v52 = vpop.f32.mrb[4].mxu0 }
 0x3ab   :  { %v452_v53 = vmax.f32 %v375_v50, %v448_v52  ;;  %v1168_v54 = vpop.f32.mrb[5].mxu0 }
 0x3ad   :  { %1174 = vmatmul.mubr.msk.f32.vlgmr.msra.gmra.mrb[2].mxu1 %vm213_vm3, %v452_v53 }
 0x3ae   :  { %1240 = vmatpush3.bf16.msra.mxu1 %v1519_v49  ;;  %1187 = vmatprep.mubr.msk.f32.mxu1 %vm1364_vm5, %v1365_v33  ;;  %v601_v55 = vpop.f32.mrb[6].mxu0 }
 0x3af   :  { %1244 = vmatprep.subr.bf16.mxu1 %v1363_v32  ;;  %v1182_v56 = vpop.f32.mrb[7].mxu0 }
 0x480   :  { %v528_v58 = vpop.f32.mrb[2].mxu1 }
 0x481   :  { %v1535_v59 = vadd.f32 %v1092_v57, %v528_v58  ;;  %v1175_v60 = vpop.f32.mrb[3].mxu1  ;;  %v86_v58 = vld [vmem:[%s1609_s10 + $0x20] sm:$0xff] }
 0x483   :  { %v605_v61 = vadd.f32 %v601_v55, %v1535_v59 }
 0x485   :  { %1263 = vtanh.f32 %v605_v61  ;;  %v1094_v63 = vmul.f32 -1.442695, %v605_v61 }
 0x487   :  { %1265 = vpow2.f32 %v1094_v63 }
 0x48f   :  { %v1264_v62 = vpop.eup %1263 }
 0x490   :  { %615 = vrot.lane.b32.xlu0 %v1264_v62, %s1366_s30 }
 0x491   :  { %v1266_v0 = vpop.eup %1265 }
 0x492   :  { %v609_v1 = vadd.f32 1.0, %v1266_v0 }
 0x494   :  { %1267 = vrcp.f32 %v609_v1 }
 0x49e   :  { %v1268_v2 = vpop.eup %1267 }
 0x49f   :  { %v613_v5 = vmul.f32 0.0, %v1268_v2 }
 0x502   :  { %v616_v3 = vpop.permute.xlu0 %615 }
 0x503   :  { %v618_v4 = vmul.f32 %v1268_v2, %v616_v3 }
 0x505   :  { %620 = vrot.lane.b32.xlu1 %v618_v4, %s1362_s23 }
 0x577   :  { %v621_v6 = vpop.permute.xlu1 %620 }
 0x578   :  { %v623_v7 = vadd.f32 %v621_v6, %v613_v5 }
 0x57a   :  { %1269 = vtanh.f32 %v623_v7  ;;  %v717_v28 = vrot.slane %v623_v7, 6 }
 0x584   :  { %v1270_v8 = vpop.eup %1269 }
 0x585   :  { %626 = vrot.lane.b32.xlu0 %v1270_v8, %s1362_s23 }
 0x5f7   :  { %v627_v9 = vpop.permute.xlu0 %626 }
 0x5f8   :  { %v629_v10 = vmul.f32 %v1268_v2, %v627_v9  ;;  %v1102_v2 = vld [vmem:[%s1610_s11] ss:$0 sm:$0xff] }
 0x5fa   :  { %631 = vrot.lane.b32.xlu1 %v629_v10, %s1367_s9 }
 0x66c   :  { %v632_v14 = vpop.permute.xlu1 %631 }
 0x66d   :  { %1188 = vmatmul.mubr.msk.f32.vlgmr.msra.gmra.mrb[4].mxu1 %vm213_vm3, %v632_v14 }
 0x66e   :  { %1246 = vmatpush3.bf16.msra.mxu1 %v1245_v13  ;;  %1201 = vmatprep.mubr.msk.f32.mxu1 %vm1364_vm5, %v1365_v33 }
 0x66f   :  { %1250 = vmatprep.subr.bf16.mxu1 %v1363_v32 }
 0x671   :  { %1202 = vmatmul.mubr.msk.f32.vlgmr.msra.gmra.mrb[6].mxu1 %vm213_vm3, %v632_v14 }
 0x672   :  { %1215 = vmatprep.mubr.msk.f32.mxu1 %vm1364_vm5, %v1365_v33 }
 0x740   :  { %v701_v15 = vpop.f32.mrb[4].mxu1 }
 0x741   :  { %v706_v16 = vrot.slane %v701_v15, 6  ;;  %v1189_v17 = vpop.f32.mrb[5].mxu1 }
 0x743   :  { %v708_v18 = vadd.f32 %v706_v16, %v1535_v59 }
 0x744   :  { %v878_v19 = vpop.f32.mrb[6].mxu1 }
 0x745   :  { %1271 = vtanh.f32 %v708_v18  ;;  %v1203_v20 = vpop.f32.mrb[7].mxu1  ;;  %v1096_v22 = vmul.f32 -1.442695, %v708_v18 }
 0x747   :  { %1273 = vpow2.f32 %v1096_v22 }
 0x74f   :  { %v1272_v21 = vpop.eup %1271 }
 0x750   :  { %721 = vrot.lane.b32.xlu0 %v1272_v21, %s1366_s30 }
 0x751   :  { %v1274_v23 = vpop.eup %1273 }
 0x752   :  { %v712_v24 = vadd.f32 1.0, %v1274_v23 }
 0x754   :  { %1275 = vrcp.f32 %v712_v24 }
 0x75e   :  { %v1276_v25 = vpop.eup %1275 }
 0x75f   :  { %v719_v29 = vmul.f32 %v1276_v25, %v717_v28 }
 0x7c2   :  { %v722_v26 = vpop.permute.xlu0 %721 }
 0x7c3   :  { %v724_v27 = vmul.f32 %v1276_v25, %v722_v26 }
 0x7c5   :  { %726 = vrot.lane.b32.xlu1 %v724_v27, %s1362_s23 }
 0x837   :  { %v727_v30 = vpop.permute.xlu1 %726 }
 0x838   :  { %v729_v31 = vadd.f32 %v727_v30, %v719_v29 }
 0x83a   :  { %1277 = vtanh.f32 %v729_v31  ;;  %v964_v54 = vrot.slane %v729_v31, 6 }
 0x844   :  { %v1278_v37 = vpop.eup %1277 }
 0x845   :  { %732 = vrot.lane.b32.xlu0 %v1278_v37, %s1362_s23 }
 0x8b7   :  { %v733_v38 = vpop.permute.xlu0 %732 }
 0x8b8   :  { %v735_v39 = vmul.f32 %v1276_v25, %v733_v38 }
 0x8ba   :  { %v737_v40 = vrot.slane %v735_v39, 2 }
 0x8bc   :  { %738 = vrot.lane.b32.xlu1 %v737_v40, %s1367_s9 }
 0x92e   :  { %v739_v41 = vpop.permute.xlu1 %738 }
 0x92f   :  { %1195 = vmatmul.mubr.msk.f32.vlgmr.msra.gmra.mrb[8].mxu0 %vm213_vm3, %v739_v41 }
 0x930   :  { %1249 = vmatpush3.bf16.msra.mxu0 %v1519_v49  ;;  %1208 = vmatprep.mubr.msk.f32.mxu0 %vm1364_vm5, %v1365_v33 }
 0x933   :  { %1209 = vmatmul.mubr.msk.f32.vlgmr.msra.gmra.mrb[10].mxu0 %vm213_vm3, %v739_v41 }
 0xa02   :  { %v808_v42 = vpop.f32.mrb[8].mxu0 }
 0xa03   :  { %v879_v32 = vadd.f32 %v878_v19, %v808_v42  ;;  %v1196_v43 = vpop.f32.mrb[9].mxu0 }
 0xa06   :  { %v948_v44 = vpop.f32.mrb[10].mxu0 }
 0xa07   :  { %v953_v45 = vrot.slane %v948_v44, 4  ;;  %v1210_v46 = vpop.f32.mrb[11].mxu0 }
 0xa09   :  { %v955_v47 = vadd.f32 %v953_v45, %v1535_v59  ;;  %v87_v59 = vld [vmem:[%s1609_s10 + $0x28] sm:$0xff]  ;;  %s1074_s10 = sshll.u32 %s1368_s3, 4  ;;  %s1075_s10 = int_to_ptr.vmem [resolvable:$true] %s1074_s10 }
 0xa0a   :  { %v1251_v60 = vpack.c.bf16 %v87_v59, %v86_v58  ;;  %p1336_p3 = scmp.lt.s32.totalorder %s1075_s10, %s1075_s10 }
 0xa0b   :  { %1279 = vtanh.f32 %v955_v47  ;;  %v1100_v50 = vmul.f32 -1.442695, %v955_v47 }
 0xa0c   :  { %1252 = vmatpush3.bf16.msra.mxu1 %v1251_v60 }
 0xa0d   :  { %1281 = vpow2.f32 %v1100_v50 }
 0xa15   :  { %v1280_v48 = vpop.eup %1279 }
 0xa16   :  { %968 = vrot.lane.b32.xlu0 %v1280_v48, %s1366_s30 }
 0xa17   :  { %v1282_v49 = vpop.eup %1281 }
 0xa18   :  { %v959_v51 = vadd.f32 1.0, %v1282_v49 }
 0xa1a   :  { %1283 = vrcp.f32 %v959_v51 }
 0xa24   :  { %v1284_v33 = vpop.eup %1283 }
 0xa25   :  { %v966_v55 = vmul.f32 %v1284_v33, %v964_v54 }
 0xa88   :  { %v969_v52 = vpop.permute.xlu0 %968 }
 0xa89   :  { %v971_v53 = vmul.f32 %v1284_v33, %v969_v52 }
 0xa8b   :  { %973 = vrot.lane.b32.xlu1 %v971_v53, %s1362_s23 }
 0xafd   :  { %v974_v56 = vpop.permute.xlu1 %973 }
 0xafe   :  { %v976_v57 = vadd.f32 %v974_v56, %v966_v55 }
 0xb00   :  { %1285 = vtanh.f32 %v976_v57 }
 0xb0a   :  { %v1286_v61 = vpop.eup %1285 }
 0xb0b   :  { %979 = vrot.lane.b32.xlu0 %v1286_v61, %s1362_s23  ;;  %s1331_s23 = scalar_lea.vmem %s1075_s10, 32 }
 0xb0c   :  { %p1332_p2 = scmp.ne.s32.totalorder %s1075_s10, %s1331_s23  ;;  %p1337_p4 = scmp.lt.s32.totalorder %s1331_s23, %s1331_s23 }
 0xb0e   :  { %p1338_p5 = por %p1337_p4, %p1336_p3 }
 0xb10   :  { %p1339_p6 = pnand %p1338_p5, %p1332_p2 }
 0xb7d   :  { %v980_v62 = vpop.permute.xlu0 %979 }
 0xb7e   :  { %v982_v63 = vmul.f32 %v1284_v33, %v980_v62 }
 0xb80   :  { %v984_v0 = vrot.slane %v982_v63, 4 }
 0xb82   :  { %985 = vrot.lane.b32.xlu1 %v984_v0, %s1367_s9 }
 0xbf4   :  { %v986_v1 = vpop.permute.xlu1 %985 }
 0xbf5   :  { %1216 = vmatmul.mubr.msk.f32.vlgmr.msra.gmra.mrb[8].mxu1 %vm213_vm3, %v986_v1 }
 0xcc8   :  { %v1055_v3 = vpop.f32.mrb[8].mxu1 }
 0xcc9   :  { %v1059_v4 = vadd.f32 %v1055_v3, %v879_v32  ;;  %v1217_v5 = vpop.f32.mrb[9].mxu1 }
 0xccb   :  { %v1066_v6 = vadd.f32 %v1102_v2, %v1059_v4 }
 0xccd   :  { %1067 = vst [vmem:[#allocation7] sm:$0x3] %v1066_v6 }
 0xcce   :  { %1342 = shalt.err (!%p1339_p6)
}
 0xccf   :  { %s1343_s26 = scalar_lea.hbm %s1611_s12, 32 }
 0xcd0   :  { %p1344_p7 = scmp.ne.s32.totalorder %s1611_s12, %s1343_s26  ;;  %p1347_p8 = scmp.lt.u32.totalorder %s1343_s26, %s1611_s12 }
 0xcd2   :  { %p1349_p9 = pnand %p1347_p8, %p1344_p7 }
 0xcd4   :  { %1352 = shalt.err (!%p1349_p9)
}
 0xcd5   :  { %1077 = dma.vmem_to_hbm [thread:$0]  %s1075_s10, 32, %s1611_s12, [#allocation4]  }
 0xcd6   :  { %1357 = dma.done.wait [#allocation4], 32  }
 0xcd7   :  { %1358 = vsyncadd [#allocation4], 4294967264 }
 0xcd8   :  { %1081 = vsyncpa [#allocation3], 1 }
 0xcd9   :  { %1082 = vsyncpa [#allocation6], 1 }
 0xcda   :  { %1083 = vsyncpa [#allocation4], 1 }

</bundles_post_ra>
